<compile_context>
chip_gen: v6e
topology: v6e:2x2x1
jax: 0.10.0
libtpu: 0.0.40
codegen_flags: <defaults>
</compile_context>

<pallas_src>
import math
import functools

import jax
import jax.numpy as jnp
from jax.experimental import pallas as pl
from jax.experimental.pallas import tpu as pltpu


# ----------------------------- helpers -----------------------------

def _layernorm(y, g, b, eps=1e-5):
    mu = jnp.mean(y, axis=-1, keepdims=True)
    var = jnp.mean(jnp.square(y - mu), axis=-1, keepdims=True)
    return (y - mu) * jax.lax.rsqrt(var + eps) * g + b


def _row_tile(M, target=512):
    """Pick a row (sublane) tile: multiple of 8 dividing M, <= target, preferring >= 2 tiles."""
    if M % 8 != 0 or M <= 8:
        return M
    tm = min(target, M)
    tm -= tm % 8
    while tm > 8 and (M % tm != 0 or M // tm < 2):
        tm -= 8
    return tm if M % tm == 0 else M


def _col_tile(N, target=512):
    """Pick a lane tile: multiple of 128 dividing N, <= target; else the full dim."""
    if N % 128 != 0:
        return N
    tn = min(target, N)
    tn -= tn % 128
    while tn > 128 and N % tn != 0:
        tn -= 128
    return tn if N % tn == 0 else N


def _layer_vmem_limit(S, tq, H):
    """Rough per-step VMEM footprint of the fused layer, with headroom, clamped for v7x."""
    bf2, f4 = 2, 4
    blocks = (tq * H + S * H) * bf2                                   # x_q, x_kv (bf16)
    blocks += (H * H + H * 2 * H + H * H + H * 4 * H + 4 * H * H) * bf2   # wq wkv wo w1 w2
    blocks += tq * H * bf2                                            # out tile
    interm = (3 * tq * H + S * 2 * H + 2 * tq * S + tq * 4 * H) * f4  # q, kv, scores, hmid, ...
    est = 2 * blocks + interm                                         # double-buffered blocks
    return int(min(64 << 20, max(32 << 20, 2 * est)))


# ----------------------------- Pallas kernels -----------------------------

def embed_mul_kernel(x_ref, w_ref, b1_ref, o_ref):
    # x = tok_emb*sqrt(H) + pos_emb ; r = linear(x) + 1 ; z = x * r   ("+1" folded into b1 on host)
    x = x_ref[...]
    r = jnp.dot(x.astype(jnp.bfloat16), w_ref[...],
                preferred_element_type=jnp.float32) + b1_ref[...]
    o_ref[...] = (x * r).astype(o_ref.dtype)


def decoder_layer_kernel(xq_ref, xkv_ref,
                         wq_ref, bq_ref, wkv_ref, bkv_ref, wo_ref, bo_ref,
                         ln1_g_ref, ln1_b_ref,
                         w1_ref, b1_ref, w2_ref, b2_ref,
                         ln2_g_ref, ln2_b_ref,
                         o_ref, *, num_heads, head_dim):
    # Fused decoder layer for one (batch, query-row-tile) grid point:
    # QKV proj -> causal softmax attention -> o_proj -> res+LN1 -> FFN -> res+LN2.
    qi = pl.program_id(1)
    xq = xq_ref[0]                      # (tq, H) bf16 query rows
    xkv = xkv_ref[0]                    # (S,  H) bf16 full sequence (for K/V)
    tq, H = xq.shape
    S = xkv.shape[0]

    x_res = xq.astype(jnp.float32)

    # Projections: Q on the query tile, fused K/V on the full sequence (one (H,2H) matmul).
    q = jnp.dot(xq, wq_ref[...], preferred_element_type=jnp.float32) + bq_ref[...]
    kv = jnp.dot(xkv, wkv_ref[...], preferred_element_type=jnp.float32) + bkv_ref[...]
    k = kv[:, :H]
    v = kv[:, H:]

    # Causal additive bias built in-kernel for this query-row tile (no (S,S) HBM mask DMA).
    row = qi * tq + jax.lax.broadcasted_iota(jnp.int32, (tq, S), 0)
    col = jax.lax.broadcasted_iota(jnp.int32, (tq, S), 1)
    bias = jnp.where(row >= col, 0.0, -1e30).astype(jnp.float32)

    scale = 1.0 / math.sqrt(head_dim)
    ctxs = []
    # TODO(synk): at large num_heads, switch to lax.fori_loop over a (nh, S, hd) relayout to
    #             bound live ranges; with nh=4 the static unroll keeps lowering simple.
    for h in range(num_heads):
        sl = slice(h * head_dim, (h + 1) * head_dim)
        qh = q[:, sl].astype(jnp.bfloat16)
        kh = k[:, sl].astype(jnp.bfloat16)
        vh = v[:, sl].astype(jnp.bfloat16)
        s = jnp.dot(qh, kh.T, preferred_element_type=jnp.float32) * scale + bias
        p = jnp.exp(s - jnp.max(s, axis=-1, keepdims=True))
        l = jnp.sum(p, axis=-1, keepdims=True)
        ctx = jnp.dot(p.astype(jnp.bfloat16), vh, preferred_element_type=jnp.float32)
        # Normalize after the PV matmul: tq*head_dim multiplies instead of tq*S.
        ctxs.append(ctx * pl.reciprocal(l, approx=True))

    # Concat heads (matches torch transpose(1,2).reshape) and do ONE K=H output projection.
    ctx_all = jnp.concatenate(ctxs, axis=-1)                           # (tq, H)
    attn = jnp.dot(ctx_all.astype(jnp.bfloat16), wo_ref[...],
                   preferred_element_type=jnp.float32) + bo_ref[...]

    # Residual + LayerNorm 1 (f32 math).
    z = _layernorm(x_res + attn, ln1_g_ref[...], ln1_b_ref[...])

    # Position-wise FFN (bf16 MXU, f32 accumulation).
    hmid = jnp.dot(z.astype(jnp.bfloat16), w1_ref[...],
                   preferred_element_type=jnp.float32) + b1_ref[...]
    hmid = jnp.maximum(hmid, 0.0)
    f = jnp.dot(hmid.astype(jnp.bfloat16), w2_ref[...],
                preferred_element_type=jnp.float32) + b2_ref[...]

    # Residual + LayerNorm 2; emit bf16 inter-layer activations.
    o_ref[0] = _layernorm(z + f, ln2_g_ref[...], ln2_b_ref[...]).astype(o_ref.dtype)


def final_norm_proj_kernel(x_ref, g_ref, b_ref, w_ref, bo_ref, o_ref, y_sc):
    # LayerNorm hoisted out of the vocab-tile loop: computed once per row tile (inner j==0)
    # into a VMEM scratch and reused for all V//tv vocab tiles.
    @pl.when(pl.program_id(1) == 0)
    def _():
        y_sc[...] = _layernorm(x_ref[...].astype(jnp.float32), g_ref[...], b_ref[...])
    o_ref[...] = jnp.dot(y_sc[...].astype(jnp.bfloat16), w_ref[...],
                         preferred_element_type=jnp.float32) + bo_ref[...]


# ----------------------------- wrappers -----------------------------

def embed_mul(x_flat, w_bf16, b_plus1):
    M, H = x_flat.shape
    tm = _row_tile(M, 512)
    return pl.pallas_call(
        embed_mul_kernel,
        out_shape=jax.ShapeDtypeStruct((M, H), jnp.bfloat16),
        grid=(M // tm,),
        in_specs=[pl.BlockSpec((tm, H), lambda i: (i, 0)),
                  pl.BlockSpec((H, H), lambda i: (0, 0)),
                  pl.BlockSpec((1, H), lambda i: (0, 0))],
        out_specs=pl.BlockSpec((tm, H), lambda i: (i, 0)),
        compiler_params=pltpu.CompilerParams(dimension_semantics=("parallel",)),
    )(x_flat, w_bf16, b_plus1)


def decoder_layer(x, lp, num_heads):
    B, S, H = x.shape
    head_dim = H // num_heads
    F4 = lp["w1"].shape[1]
    tq = _row_tile(S, 256)
    kern = functools.partial(decoder_layer_kernel, num_heads=num_heads, head_dim=head_dim)

    xq_spec = pl.BlockSpec((1, tq, H), lambda b, i: (b, i, 0))     # query-row tile
    xkv_spec = pl.BlockSpec((1, S, H), lambda b, i: (b, 0, 0))     # full sequence for K/V

    def rep(shape):  # weight / bias blocks resident across the grid
        return pl.BlockSpec(shape, lambda b, i: (0, 0))

    in_specs = [xq_spec, xkv_spec,
                rep((H, H)), rep((1, H)),                          # wq, bq
                rep((H, 2 * H)), rep((1, 2 * H)),                  # fused wkv, bkv
                rep((H, H)), rep((1, H)),                          # wo, bo
                rep((1, H)), rep((1, H)),                          # ln1 gamma/beta
                rep((H, F4)), rep((1, F4)), rep((F4, H)), rep((1, H)),  # w1 b1 w2 b2
                rep((1, H)), rep((1, H))]                          # ln2 gamma/beta

    return pl.pallas_call(
        kern,
        out_shape=jax.ShapeDtypeStruct((B, S, H), jnp.bfloat16),
        grid=(B, S // tq),
        in_specs=in_specs,
        out_specs=xq_spec,
        compiler_params=pltpu.CompilerParams(
            dimension_semantics=("parallel", "parallel"),
            vmem_limit_bytes=_layer_vmem_limit(S, tq, H)),
    )(x, x,
      lp["wq"], lp["bq"], lp["wkv"], lp["bkv"], lp["wo"], lp["bo"],
      lp["ln1_g"], lp["ln1_b"],
      lp["w1"], lp["b1"], lp["w2"], lp["b2"],
      lp["ln2_g"], lp["ln2_b"])


def final_norm_proj(x_flat, g, b, w_bf16, bo):
    M, H = x_flat.shape
    V = w_bf16.shape[1]
    tm = _row_tile(M, 256)
    tv = _col_tile(V, 512)
    return pl.pallas_call(
        final_norm_proj_kernel,
        out_shape=jax.ShapeDtypeStruct((M, V), jnp.float32),
        grid=(M // tm, V // tv),
        in_specs=[pl.BlockSpec((tm, H), lambda i, j: (i, 0)),
                  pl.BlockSpec((1, H), lambda i, j: (0, 0)),
                  pl.BlockSpec((1, H), lambda i, j: (0, 0)),
                  pl.BlockSpec((H, tv), lambda i, j: (0, j)),
                  pl.BlockSpec((1, tv), lambda i, j: (0, j))],
        out_specs=pl.BlockSpec((tm, tv), lambda i, j: (i, j)),
        scratch_shapes=[pltpu.VMEM((tm, H), jnp.float32)],
        compiler_params=pltpu.CompilerParams(
            dimension_semantics=("parallel", "arbitrary")),
    )(x_flat, g, b, w_bf16, bo)


# ----------------------------- model setup -----------------------------

def make_sinusoidal_pe(max_length, d_x):
    position = jnp.arange(max_length, dtype=jnp.float32)[:, None]
    div_term = jnp.exp(jnp.arange(0, d_x, 2, dtype=jnp.float32) * -(math.log(10000.0) / d_x))
    pe = jnp.zeros((max_length, d_x), dtype=jnp.float32)
    pe = pe.at[:, 0::2].set(jnp.sin(position * div_term))
    pe = pe.at[:, 1::2].set(jnp.cos(position * div_term))
    return pe


def init_params(key, vocab_size, hidden_size, num_layers, num_heads, pe_max_length=200):
    H, V = hidden_size, vocab_size
    keys = iter(jax.random.split(key, 8 + 16 * num_layers))
    std = 1.0 / math.sqrt(H)

    def lin(kin, kout, s):
        # Matmul weights stored (in, out) in bf16 for the MXU; biases stay f32.
        return (jax.random.normal(next(keys), (kin, kout), jnp.float32) * s).astype(jnp.bfloat16)

    params = {
        "emb_table": jax.random.normal(next(keys), (V, H), jnp.float32) * std,
        "pe": make_sinusoidal_pe(pe_max_length, H),
        "emb_lin_w": lin(H, H, std),
        # "+1" of z = x * (linear(x) + 1) folded into the bias:
        "emb_lin_b1": jnp.ones((1, H), jnp.float32),
        "layers": [],
        "final_g": jnp.ones((1, H), jnp.float32),
        "final_b": jnp.zeros((1, H), jnp.float32),
        "out_w": lin(H, V, std),
        "out_b": jnp.zeros((1, V), jnp.float32),
    }
    for _ in range(num_layers):
        wk = lin(H, H, std)
        wv = lin(H, H, std)
        params["layers"].append({
            "wq": lin(H, H, std), "bq": jnp.zeros((1, H), jnp.float32),
            # K/V projections fused host-side into one (H, 2H) weight.
            "wkv": jnp.concatenate([wk, wv], axis=1),
            "bkv": jnp.zeros((1, 2 * H), jnp.float32),
            "wo": lin(H, H, std), "bo": jnp.zeros((1, H), jnp.float32),
            "ln1_g": jnp.ones((1, H), jnp.float32), "ln1_b": jnp.zeros((1, H), jnp.float32),
            "ln2_g": jnp.ones((1, H), jnp.float32), "ln2_b": jnp.zeros((1, H), jnp.float32),
            "w1": lin(H, 4 * H, std), "b1": jnp.zeros((1, 4 * H), jnp.float32),
            "w2": lin(4 * H, H, 1.0 / math.sqrt(4 * H)), "b2": jnp.zeros((1, H), jnp.float32),
        })
    return params


def transformer_decoder_forward(params, input_ids, num_heads):
    B, S = input_ids.shape
    H = params["emb_table"].shape[1]
    V = params["out_w"].shape[1]
    M = B * S

    # --- EmbeddingMultilinearSinusoidal (token gather stays in JAX) ---
    tok_emb = params["emb_table"][input_ids] * math.sqrt(H)          # (B, S, H)
    x = tok_emb + params["pe"][None, :S, :]
    z = embed_mul(x.reshape(M, H), params["emb_lin_w"], params["emb_lin_b1"]).reshape(B, S, H)

    # --- fused decoder layers (one pallas_call per layer, bf16 inter-layer activations) ---
    for lp in params["layers"]:
        z = decoder_layer(z, lp, num_heads)

    # --- final LayerNorm + output projection (LN hoisted out of the vocab-tile loop) ---
    logits = final_norm_proj(z.reshape(M, H), params["final_g"], params["final_b"],
                             params["out_w"], params["out_b"])
    return logits.reshape(B, S, V)


# ----------------------------- main -----------------------------

if __name__ == "__main__":
    vocab_size = 32
    hidden_size = 32
    num_layers = 2
    num_heads = 4
    batch = 2
    seq = 8

    key = jax.random.PRNGKey(0)
    k_params, k_ids = jax.random.split(key)
    params = init_params(k_params, vocab_size, hidden_size, num_layers, num_heads)
    input_ids = jax.random.randint(k_ids, (batch, seq), 0, vocab_size, dtype=jnp.int32)

    logits = transformer_decoder_forward(params, input_ids, num_heads)
    logits = jax.block_until_ready(logits)

    assert logits.shape == (batch, seq, vocab_size), logits.shape
    assert bool(jnp.all(jnp.isfinite(logits)))
    print("KERNEL_OK")
</pallas_src>

<mosaic_0001>
module attributes {stable_mosaic.version = 11 : i64} {
  func.func @embed_mul_kernel(%arg0: i32, %arg1: memref<8x32xf32, #tpu.memory_space<vmem>>, %arg2: memref<32x32xbf16, #tpu.memory_space<vmem>>, %arg3: memref<1x32xf32, #tpu.memory_space<vmem>>, %arg4: memref<8x32xbf16, #tpu.memory_space<vmem>>) attributes {dimension_semantics = [#tpu.dimension_semantics<parallel>], iteration_bounds = array<i64: 2>, scalar_prefetch = 0 : i64, scratch_operands = 0 : i64, tpu.core_type = #tpu.core_type<tc>, window_params = [{transform_indices = @transform_0, window_bounds = array<i64: 8, 32>}, {pipeline_mode = #tpu.pipeline_mode<synchronous>, transform_indices = @transform_1, window_bounds = array<i64: 32, 32>}, {pipeline_mode = #tpu.pipeline_mode<synchronous>, transform_indices = @transform_2, window_bounds = array<i64: 1, 32>}, {transform_indices = @transform_3, window_bounds = array<i64: 8, 32>}]} {
    %c0 = arith.constant 0 : index
    %c0_0 = arith.constant 0 : index
    %0 = vector.load %arg1[%c0, %c0_0] : memref<8x32xf32, #tpu.memory_space<vmem>>, vector<8x32xf32>
    %1 = arith.truncf %0 : vector<8x32xf32> to vector<8x32xbf16>
    %c0_1 = arith.constant 0 : index
    %c0_2 = arith.constant 0 : index
    %2 = vector.load %arg2[%c0_1, %c0_2] : memref<32x32xbf16, #tpu.memory_space<vmem>>, vector<32x32xbf16>
    %cst = arith.constant dense<0.000000e+00> : vector<8x32xf32>
    %3 = tpu.matmul %1, %2, %cst {dimension_numbers = #tpu.dot_dimension_numbers<[1], [0], [0], [1], [0, 0, 1, 1], [], []>} : vector<8x32xbf16>, vector<32x32xbf16>, vector<8x32xf32> -> vector<8x32xf32>
    %c0_3 = arith.constant 0 : index
    %c0_4 = arith.constant 0 : index
    %4 = vector.load %arg3[%c0_3, %c0_4] : memref<1x32xf32, #tpu.memory_space<vmem>>, vector<1x32xf32>
    %5 = vector.broadcast %4 : vector<1x32xf32> to vector<8x32xf32>
    %6 = arith.addf %3, %5 : vector<8x32xf32>
    %7 = arith.mulf %0, %6 : vector<8x32xf32>
    %8 = arith.truncf %7 : vector<8x32xf32> to vector<8x32xbf16>
    %c0_5 = arith.constant 0 : index
    %c0_6 = arith.constant 0 : index
    %9 = vector.load %arg4[%c0_5, %c0_6] : memref<8x32xbf16, #tpu.memory_space<vmem>>, vector<8x32xbf16>
    tpu.vector_store %arg4[%c0_5, %c0_6], %8 {strides = array<i32>} : memref<8x32xbf16, #tpu.memory_space<vmem>>, vector<8x32xbf16>,
    return
  }
  func.func @transform_0(%arg0: i32) -> (i32, i32) {
    %c0_i32 = arith.constant 0 : i32
    %c0_i32_0 = arith.constant 0 : i32
    return %arg0, %c0_i32 : i32, i32
  }
  func.func @transform_1(%arg0: i32) -> (i32, i32) {
    %c0_i32 = arith.constant 0 : i32
    %c0_i32_0 = arith.constant 0 : i32
    %c0_i32_1 = arith.constant 0 : i32
    return %c0_i32, %c0_i32_0 : i32, i32
  }
  func.func @transform_2(%arg0: i32) -> (i32, i32) {
    %c0_i32 = arith.constant 0 : i32
    %c0_i32_0 = arith.constant 0 : i32
    %c0_i32_1 = arith.constant 0 : i32
    return %c0_i32, %c0_i32_0 : i32, i32
  }
  func.func @transform_3(%arg0: i32) -> (i32, i32) {
    %c0_i32 = arith.constant 0 : i32
    %c0_i32_0 = arith.constant 0 : i32
    return %arg0, %c0_i32 : i32, i32
  }
}

</mosaic_0001>

<bundles_post_ra>
// kernel: tpu_custom_call.1
= control target key start
LH: loop header
LB: loop body
LE: loop exit
PB: predicated region body
PF: predicated region fallthrough
CT: control target
= control target key end

     0   :  { %8 = vsyncpa [#allocation3], 0  ;;  %s776_s0 = inlined_call_operand.hbm [shape: f32[16,32], index: 0, kind: input, shape index: {}]   ;;  %s777_s1 = inlined_call_operand.hbm [shape: bf16[32,32], index: 1, kind: input, shape index: {}]   ;;  %s778_s2 = inlined_call_operand.vmem [shape: f32[1,32], index: 2, kind: input, shape index: {}]   ;;  %s779_s3 = inlined_call_operand.hbm [shape: bf16[16,32], index: 3, kind: output, shape index: {}]  }
   0x1   :  { %10 = vsyncpa [#allocation3 + $0x1], 0 }
   0x2   :  { %11 = vsyncpa [#allocation6], 0 }
   0x3   :  { %12 = vsyncpa [#allocation4], 0 }
   0x4   :  { %14 = vsyncpa [#allocation4 + $0x1], 0  ;;  %s612_s12 = smov 0   ;;  %s614_s13 = smov 0  }
   0x5   :  { %s616_s14 = smov 0   ;;  %s618_s15 = smov 0  }
   0x6 LB: > { %s633_s16 = sadd.s32 4294967295, %s583_s15   ;;  %s369_s17 = sadd.s32 4294967294, %s583_s15   ;;  %s583_s15 = sphi %s618_s15, %s801_s15   ;;  %s579_s14 = sphi %s616_s14, %s800_s14   ;;  %s575_s13 = sphi %s614_s13, %s799_s13   ;;  %s571_s12 = sphi %s612_s12, %s798_s12  }
   0x7   : > { %p40_p0 = scmp.ne.s32.totalorder %s575_s13, %s571_s12  ;;  %p780_p1 = scmp.eq.s32.totalorder %s633_s16, 0 }
   0x8   : > { %p112_p3 = scmp.eq.s32.totalorder %s369_s17, 1  ;;  %p370_p5 = scmp.ge.s32.totalorder %s583_s15, 1 }
   0x9   : > { %p642_p4 = por %p780_p1, %p40_p0  ;;  %p119_p7 = scmp.lt.s32.totalorder %s583_s15, 3 }
   0xa   : > { %p647_p6 = por %p112_p3, %p40_p0  ;;  %s585_s21 = smov [#allocation5]  }
   0xb   : > { %s784_s18 = scalar_select %p642_p4, 1, 0 }
   0xc   : > { %s785_s19 = scalar_select %p647_p6, 1, 0 }
   0xd   : > { %p652_p8 = pnand %p370_p5, %p119_p7  ;;  %s131_s22 = sshll.u32 %s585_s21, 4  ;;  %s132_s22 = int_to_ptr.vmem [resolvable:$true] %s131_s22 }
   0xe   : > { %s666_s24 = sadd.s32 1, %s583_s15   ;;  %s27_s25 = sadd.s32 1, %s579_s14 }
   0xf   : > { %s786_s20 = scalar_select %p652_p8, 1, 0 }
  0x10   : > { %p406_p9 = pneg %p652_p8  ;;  %s24_s26 = ssub.s32 %s583_s15, %s666_s24 }
  0x11   : > { %s472_s27 = scalar_lea.vmem %s132_s22, 256  ;;  %p480_p5 = scmp.lt.s32.totalorder %s132_s22, %s132_s22 }
  0x12   : > { %p661_p11 = pnand %p406_p9, %p780_p1  ;;  %p473_p13 = scmp.ne.s32.totalorder %s132_s22, %s472_s27 }
  0x13   : > { %p481_p7 = scmp.lt.s32.totalorder %s472_s27, %s472_s27 }
  0x14   : > { %p463_p12 = pneg %p661_p11 }
  0x15   : > { %p482_p10 = por %p481_p7, %p480_p5 }
  0x16   : > { %p475_p0 = pnand %p473_p13, %p463_p12 }
  0x18   : > { %p476_p3 = pneg %p475_p0 }
  0x1a   : > { %p483_p2 = pnand %p482_p10, %p476_p3 }
  0x1c   : > { %486 = shalt.err (!%p483_p2)
}
  0x1d   : > { %s586_s28 = smov 64   ;;  %s587_s29 = smov 4  }
  0x1e   : > { %409 = dma.hbm_to_vmem [thread:$0]  (!%p661_p11), %s777_s1, 256, %s132_s22, [#allocation6], %s586_s28, %s586_s28, %s587_s29  }
  0x1f   : > { %p25_p9 = scmp.eq.s32.totalorder %s24_s26, 0  ;;  %p34_p12 = scmp.ne.s32.totalorder %s579_s14, %s575_s13 }
  0x20   : > { %p35_p10 = scmp.eq.s32.totalorder %s583_s15, 0  ;;  %p419_p2 = scmp.lt.s32.totalorder %s583_s15, 2 }
  0x21   : > { %s683_s5 = scalar_select %p25_p9, %s579_s14, %s27_s25  }
  0x22   : > { %p36_p13 = por %p35_p10, %p34_p12  ;;  %p788_p0 = scmp.eq.s32.totalorder %s633_s16, 1 }
  0x23   : > { %s148_s7 = sand.u32 1, %s579_s14   ;;  %s374_s8 = sshll.u32 %s583_s15, 7 }
  0x24   : > { %p687_p3 = por %p788_p0, %p34_p12  ;;  %s373_s9 = sshll.u32 %s148_s7, 3 }
  0x25   : > { %s696_s17 = scalar_lea.hbm %s776_s0, %s374_s8  ;;  %s152_s21 = scalar_lea.vmem [#allocation2], %s373_s9 }
  0x26   : > { %s789_s6 = scalar_select %p687_p3, 1, 0 }
  0x27   : > { %s159_s22 = sshll.u32 %s152_s21, 4  ;;  %p698_p11 = pnand %p419_p2, %p36_p13  ;;  %s160_s22 = int_to_ptr.vmem [resolvable:$true] %s159_s22 }
  0x28   : > { %s149_s25 = scalar_lea.sflag [#allocation3], %s148_s7  ;;  %s487_s26 = scalar_lea.hbm %s696_s17, 128 }
  0x29   : > { %p488_p5 = scmp.ne.s32.totalorder %s696_s17, %s487_s26  ;;  %p489_p7 = pneg %p698_p11 }
  0x2a   : > { %s492_s29 = scalar_lea.hbm %s776_s0, 256  ;;  %p493_p10 = scmp.lt.s32.totalorder %s696_s17, %s776_s0 }
  0x2b   : > { %p490_p9 = pnand %p489_p7, %p488_p5  ;;  %p494_p2 = scmp.lt.s32.totalorder %s492_s29, %s487_s26 }
  0x2d   : > { %p491_p12 = pneg %p490_p9  ;;  %p495_p13 = por %p494_p2, %p493_p10 }
  0x2f   : > { %p496_p0 = pnand %p495_p13, %p491_p12 }
  0x31   : > { %499 = shalt.err (!%p496_p0)
}
  0x32   : > { %s500_s8 = scalar_lea.vmem %s160_s22, 128  ;;  %s588_s7 = smov [#allocation2]  }
  0x33   : > { %p501_p1 = scmp.ne.s32.totalorder %s160_s22, %s500_s8  ;;  %s505_s9 = sshll.u32 %s588_s7, 4  ;;  %s506_s9 = int_to_ptr.vmem [resolvable:$false] %s505_s9 }
  0x34   : > { %s507_s10 = scalar_lea.vmem %s506_s9, 256  ;;  %p508_p5 = scmp.lt.s32.totalorder %s160_s22, %s506_s9 }
  0x35   : > { %p503_p6 = pnand %p501_p1, %p489_p7  ;;  %p509_p9 = scmp.lt.s32.totalorder %s507_s10, %s500_s8 }
  0x37   : > { %p504_p3 = pneg %p503_p6  ;;  %p510_p4 = por %p509_p9, %p508_p5 }
  0x39   : > { %p511_p8 = pnand %p510_p4, %p504_p3 }
  0x3b   : > { %514 = shalt.err (!%p511_p8)
}
  0x3c   : > { %413 = dma.hbm_to_vmem [thread:$0]  (!%p698_p11), %s696_s17, 128, %s160_s22, %s149_s25  }
  0x3d   : > { %p791_p12 = scmp.ne.s32.totalorder %s786_s20, 0 }
  0x3e   : > { %s719_s11 = sand.u32 (!%p791_p12), 1, %s575_s13   ;;  %p792_p1 = scmp.ne.s32.totalorder (!%p791_p12), %s784_s18, 0 }
  0x3f   : > { %168 = sbr.rel (%p791_p12) target bundleno = 293 (0x125), region = 32  ;;  %s376_s21 = sshll.u32 (!%p791_p12), %s719_s11, 3 }
  0x40   : > { %s171_s26 = scalar_lea.sflag (!%p791_p12), [#allocation3], %s719_s11  ;;  %s174_s27 = scalar_lea.vmem (!%p791_p12), [#allocation2], %s376_s21 }
  0x44   : > { %558 = dma.done.wait (%p792_p1), %s171_s26, 128  }
  0x45   : > { %560 = vsyncadd (%p792_p1), %s171_s26, 4294967168  ;;  %p793_p4 = scmp.eq.s32.totalorder %s633_s16, 0 }
  0x47   : > { %562 = dma.done.wait (%p793_p4), [#allocation6], 256   ;;  %p794_p6 = pmov %p793_p4 }
  0x48   : > { %v589_v0 = vmov 0.0   ;;  %vm590_vm0 = vmmov 0   ;;  %v459_v1 = vld [vmem:[#allocation5 + $0x8] sm:$0xff]   ;;  %v460_v2 = vld [vmem:[#allocation5] sm:$0xff]   ;;  %v202_v3 = vld [vmem:[%s174_s27] sm:$0xff]  ;;  %vm227_vm1 = vcmask 261120  }
  0x49   : > { %564 = vsyncadd (%p794_p6), [#allocation6], 4294967040  ;;  %390 = vmatprep.subr.bf16.mxu0 %v589_v0  ;;  %394 = vmatprep.mubr.msk.bf16.mxu0 %vm590_vm0, %v589_v0  ;;  %v203_v4 = vpack.c.bf16 %v202_v3, %v202_v3  ;;  %s378_s18 = sshll.u32 %s719_s11, 2  ;;  %v379_v5 = vld [vmem:[%s778_s2] ss:$0 sm:$0xff]  ;;  %s384_s22 = sshll.u32 %s633_s16, 6 }
  0x4a   : > { %391 = vmatpush3.bf16.msra.mxu0 %v459_v1  ;;  %s200_s23 = scalar_lea.vmem [#allocation7], %s378_s18  ;;  %vm273_vm2 = vcmask 257024   ;;  %s739_s30 = scalar_lea.hbm %s779_s3, %s384_s22 }
  0x4b   : > { %392 = vmatprep.subr.bf16.mxu0 %v589_v0  ;;  %s289_s25 = sshll.u32 %s200_s23, 4  ;;  %s276_s4 = scalar_lea.sflag [#allocation4], %s719_s11  ;;  %s290_s25 = int_to_ptr.vmem [resolvable:$true] %s289_s25 }
  0x4c   : > { %s515_s8 = scalar_lea.vmem %s290_s25, 64  ;;  %p795_p3 = scmp.ne.s32.totalorder %s789_s6, 0 }
  0x4d   : > { %p516_p8 = scmp.ne.s32.totalorder %s290_s25, %s515_s8  ;;  %s591_s16 = smov [#allocation7]  }
  0x4e   : > { %393 = vmatpush3.bf16.msra.mxu0 %v460_v2  ;;  %s519_s7 = sshll.u32 %s591_s16, 4  ;;  %s520_s7 = int_to_ptr.vmem [resolvable:$false] %s519_s7 }
  0x4f   : > { %p517_p11 = pnand %p516_p8, %p795_p3  ;;  %s521_s9 = scalar_lea.vmem %s520_s7, 128 }
  0x50   : > { %p522_p10 = scmp.lt.s32.totalorder %s290_s25, %s520_s7  ;;  %p523_p2 = scmp.lt.s32.totalorder %s521_s9, %s515_s8 }
  0x51   : > { %395 = vmatmul.mubr.msk.bf16.vlgmr.msra.gmra.mxu0 %vm227_vm1, %v203_v4  ;;  %p518_p7 = pneg %p517_p11 }
  0x52   : > { %p524_p13 = por %p523_p2, %p522_p10 }
  0x54   : > { %p525_p0 = pnand %p524_p13, %p518_p7 }
 0x111   : > { %v265_v6 = vpop.f32.mrf.mxu0 }
 0x112   : > { %v266_v7 = vadd.f32 %v379_v5, %v265_v6 }
 0x113   : > { %v396_v8 = vpop.f32.mrf.mxu0 }
 0x114   : > { %v271_v9 = vmul.f32 %v266_v7, %v202_v3 }
 0x115   : > { %v268_v10 = vpop.f32.mrf.mxu0 }
 0x116   : > { %v272_v11 = vpack.c.bf16 %v271_v9, %v271_v9 }
 0x117   : > { %v397_v12 = vpop.f32.mrf.mxu0 }
 0x118   : > { %274 = vst.msk [vmem:[%s200_s23] sm:$0xf] %vm273_vm2, %v272_v11 }
 0x119   : > { %528 = shalt.err (!%p525_p0)
}
 0x11a   : > { %s529_s10 = scalar_lea.hbm %s739_s30, 64  ;;  %s533_s26 = scalar_lea.hbm %s779_s3, 128 }
 0x11b   : > { %p530_p5 = scmp.ne.s32.totalorder %s739_s30, %s529_s10  ;;  %p534_p1 = scmp.lt.s32.totalorder %s739_s30, %s779_s3 }
 0x11c   : > { %p535_p4 = scmp.lt.s32.totalorder %s533_s26, %s529_s10 }
 0x11d   : > { %p531_p9 = pnand %p530_p5, %p795_p3 }
 0x11e   : > { %p536_p6 = por %p535_p4, %p534_p1 }
 0x11f   : > { %p532_p12 = pneg %p531_p9 }
 0x121   : > { %p537_p8 = pnand %p536_p6, %p532_p12 }
 0x123   : > { %540 = shalt.err (!%p537_p8)
}
 0x124   : > { %404 = dma.vmem_to_hbm [thread:$0]  (%p795_p3), %s290_s25, 64, %s739_s30, %s276_s4  }
 0x125 PF: > { %s301_s20 = sand.u32 1, %s571_s12   ;;  %p796_p11 = scmp.ne.s32.totalorder %s785_s19, 0 }
 0x126   : > { %p797_p7 = scmp.ge.s32.totalorder %s583_s15, 2  ;;  %s302_s17 = scalar_lea.sflag [#allocation4], %s301_s20 }
 0x128   : > { %p415_p10 = pnand %p797_p7, %p796_p11 }
 0x12a   : > { %p416_p2 = pneg %p415_p10 }
 0x12c   : > { %566 = dma.done.wait (%p416_p2), %s302_s17, 64  }
 0x12d   : > { %568 = vsyncadd (%p416_p2), %s302_s17, 4294967232  ;;  %p17_p13 = scmp.ge.s32.totalorder %s666_s24, 4   ;;  %s798_s12 = smov %s575_s13 }
 0x12e   : > { %s799_s13 = smov %s579_s14  ;;  %s800_s14 = smov %s683_s5 }
 0x12f   : > { %s801_s15 = smov %s666_s24  ;;  %19 = sbr.rel (!%p17_p13) target bundleno = 6 (0x6), region = 81 }
 0x134   :  { %307 = vsyncpa [#allocation3], 1 }
 0x135   :  { %309 = vsyncpa [#allocation3 + $0x1], 1 }
 0x136   :  { %310 = vsyncpa [#allocation6], 1 }
 0x137   :  { %311 = vsyncpa [#allocation4], 1 }
 0x138   :  { %313 = vsyncpa [#allocation4 + $0x1], 1 }

</bundles_post_ra>
